<compile_context>
chip_gen: v7x
topology: tpu7x:2x2x1
jax: 0.10.0
libtpu: 0.0.40
codegen_flags: <defaults>
</compile_context>

<pallas_src>
import functools

import jax
import jax.numpy as jnp
import numpy as np
from jax.experimental import pallas as pl
from jax.experimental.pallas import tpu as pltpu

_SUPPORTED = ("sigmoid", "logsigmoid", "softmax", "logsoftmax",
              "tanh", "relu", "leakyrelu")

# Flip to True to route the sigmoid / softmax divides through the EUP's
# approximate reciprocal (frees a VALU slot; introduces ~1e-3 relative error).
# Kept exact by default so results match the PyTorch reference tightly.
_APPROX_RECIPROCAL = False

_TARGET_BLOCK_BYTES = 4 * 1024 * 1024   # ~4 MiB per block (v7x-safe)
_VMEM_LIMIT_BYTES = 32 * 1024 * 1024    # covers 4 double-buffers + headroom on all gens


def _activation_kernel(x_ref, o_ref, *, act: str, negative_slope: float = 0.2):
    """One (TR, D) tile: apply the activation; softmax reduces over lanes."""
    x = x_ref[...]

    if act == "relu":
        # Pure VALU compare/select; computed in the input dtype (bf16 OK).
        y = jnp.maximum(x, 0)
    elif act == "leakyrelu":
        y = jnp.where(x >= 0, x, negative_slope * x)
    elif act == "tanh":
        y = jnp.tanh(x.astype(jnp.float32))
    elif act == "sigmoid":
        xf = x.astype(jnp.float32)
        y = pl.reciprocal(1.0 + jnp.exp(-xf), approx=_APPROX_RECIPROCAL)
    elif act == "logsigmoid":
        # Stable: logsigmoid(x) = min(x, 0) - log1p(exp(-|x|))
        xf = x.astype(jnp.float32)
        y = jnp.minimum(xf, 0.0) - jnp.log1p(jnp.exp(-jnp.abs(xf)))
    elif act == "softmax":
        xf = x.astype(jnp.float32)
        m = jnp.max(xf, axis=-1, keepdims=True)
        e = jnp.exp(xf - m)
        denom = jnp.sum(e, axis=-1, keepdims=True)
        y = e * pl.reciprocal(denom, approx=_APPROX_RECIPROCAL)
    elif act == "logsoftmax":
        xf = x.astype(jnp.float32)
        s = xf - jnp.max(xf, axis=-1, keepdims=True)
        y = s - jnp.log(jnp.sum(jnp.exp(s), axis=-1, keepdims=True))
    else:
        y = x

    o_ref[...] = y.astype(o_ref.dtype)


def _lane_dense_shape(total: int):
    """(rows, lanes) view for elementwise ops: lanes a multiple of 128."""
    if total % 128 != 0:
        return None
    for lanes in (2048, 1024, 512, 256, 128):   # prefer wide, but keep >=8 rows
        if total % lanes == 0 and total // lanes >= 8:
            return (total // lanes, lanes)
    for lanes in (2048, 1024, 512, 256, 128):
        if total % lanes == 0:
            return (total // lanes, lanes)
    return None


def _pick_block_rows(rows: int, lanes: int, itemsize: int,
                     target_block_bytes: int) -> int:
    """Rows per block: multiple of 8 (or == rows), sized to ~target bytes."""
    tr = max(1, target_block_bytes // max(1, lanes * itemsize))
    tr = max(8, (tr // 8) * 8)
    if tr < rows:
        return tr                      # >= 2 blocks; partial last block masked
    if rows >= 16:
        # Split into >= 2 blocks so Mosaic can shard the "parallel" grid axis
        # across the two TensorCores on v7x.
        half = -(-rows // 2)
        half = ((half + 7) // 8) * 8
        if half < rows:
            return half
    return rows                        # single block covering the full dim


def activation(x, act: str, *, target_block_bytes: int = _TARGET_BLOCK_BYTES):
    """Pallas equivalent of Activation(act).forward(x). Works for any rank >= 1."""
    if act not in _SUPPORTED:
        # PyTorch module: unknown act -> self.act = None -> identity, no work.
        return x
    if x.ndim == 0:
        return activation(x.reshape(1, 1), act,
                          target_block_bytes=target_block_bytes).reshape(())

    orig_shape = x.shape
    itemsize = jnp.dtype(x.dtype).itemsize
    rowwise = act in ("softmax", "logsoftmax")
    total = int(np.prod(orig_shape))

    if rowwise:
        # Reduction over the last dim: keep it (entirely) on the lane axis.
        # TODO(synk): for very small last dims (e.g. W=16) several softmax rows
        # could be packed per 128-lane vector; not done here (lower priority).
        D = orig_shape[-1]
        R = total // D
    else:
        # Elementwise: re-view lane-dense so stores are full-width (unmasked).
        rd = _lane_dense_shape(total)
        if rd is None:
            D = orig_shape[-1]
            R = total // D
        else:
            R, D = rd
    x2 = x.reshape(R, D)

    TR = _pick_block_rows(R, D, itemsize, target_block_bytes)
    grid = (pl.cdiv(R, TR),)

    out = pl.pallas_call(
        functools.partial(_activation_kernel, act=act),
        out_shape=jax.ShapeDtypeStruct((R, D), x.dtype),
        grid=grid,
        in_specs=[pl.BlockSpec((TR, D), lambda i: (i, 0))],
        out_specs=pl.BlockSpec((TR, D), lambda i: (i, 0)),
        compiler_params=pltpu.CompilerParams(
            dimension_semantics=("parallel",),
            vmem_limit_bytes=_VMEM_LIMIT_BYTES),
    )(x2)

    return out.reshape(orig_shape)


def _reference(x, act):
    if act == "sigmoid":
        return jax.nn.sigmoid(x)
    if act == "logsigmoid":
        return jax.nn.log_sigmoid(x)
    if act == "softmax":
        return jax.nn.softmax(x, axis=-1)
    if act == "logsoftmax":
        return jax.nn.log_softmax(x, axis=-1)
    if act == "tanh":
        return jnp.tanh(x)
    if act == "relu":
        return jax.nn.relu(x)
    if act == "leakyrelu":
        return jnp.where(x >= 0, x, 0.2 * x)
    return x


if __name__ == "__main__":
    acts = ("sigmoid", "logsigmoid", "softmax", "logsoftmax",
            "tanh", "relu", "leakyrelu", "none")

    # NCHW input like the PyTorch module typically receives.
    x = jax.random.normal(jax.random.PRNGKey(0), (2, 4, 16, 16),
                          dtype=jnp.float32)
    for act in acts:
        y = jax.block_until_ready(activation(x, act))
        np.testing.assert_allclose(np.asarray(y), np.asarray(_reference(x, act)),
                                   rtol=1e-5, atol=1e-5)

    # Odd row count: exercises the masked partial last block (no padding path).
    x_odd = jax.random.normal(jax.random.PRNGKey(1), (2, 4, 17, 16),
                              dtype=jnp.float32)
    for act in ("softmax", "logsoftmax", "relu", "leakyrelu"):
        y = jax.block_until_ready(activation(x_odd, act))
        np.testing.assert_allclose(np.asarray(y),
                                   np.asarray(_reference(x_odd, act)),
                                   rtol=1e-5, atol=1e-5)

    # bf16 fast path for the pure-VALU activations (no f32 upcast in-kernel).
    x_bf16 = x.astype(jnp.bfloat16)
    for act in ("relu", "leakyrelu"):
        y = jax.block_until_ready(activation(x_bf16, act))
        np.testing.assert_allclose(np.asarray(y, dtype=np.float32),
                                   np.asarray(_reference(x_bf16, act),
                                              dtype=np.float32),
                                   rtol=1e-2, atol=1e-2)

    print("KERNEL_OK")
</pallas_src>

<mosaic_0001>
module attributes {stable_mosaic.version = 11 : i64} {
  func.func @_activation_kernel(%arg0: i32, %arg1: memref<8x256xf32, #tpu.memory_space<vmem>>, %arg2: memref<8x256xf32, #tpu.memory_space<vmem>>) attributes {dimension_semantics = [#tpu.dimension_semantics<parallel>], iteration_bounds = array<i64: 1>, scalar_prefetch = 0 : i64, scratch_operands = 0 : i64, tpu.core_type = #tpu.core_type<tc>, window_params = [{transform_indices = @transform_0, window_bounds = array<i64: 8, 256>}, {transform_indices = @transform_1, window_bounds = array<i64: 8, 256>}]} {
    %c0 = arith.constant 0 : index
    %c0_0 = arith.constant 0 : index
    %0 = vector.load %arg1[%c0, %c0_0] : memref<8x256xf32, #tpu.memory_space<vmem>>, vector<8x256xf32>
    %cst = arith.constant 0.000000e+00 : f32
    %1 = vector.broadcast %cst : f32 to vector<8x256xf32>
    %2 = arith.subf %1, %0 : vector<8x256xf32>
    %3 = math.exp %2 : vector<8x256xf32>
    %cst_1 = arith.constant 1.000000e+00 : f32
    %4 = vector.broadcast %cst_1 : f32 to vector<8x256xf32>
    %5 = arith.addf %4, %3 : vector<8x256xf32>
    %6 = tpu.reciprocal %5 : vector<8x256xf32> -> vector<8x256xf32>
    %c0_2 = arith.constant 0 : index
    %c0_3 = arith.constant 0 : index
    %7 = vector.load %arg2[%c0_2, %c0_3] : memref<8x256xf32, #tpu.memory_space<vmem>>, vector<8x256xf32>
    tpu.vector_store %arg2[%c0_2, %c0_3], %6 {strides = array<i32>} : memref<8x256xf32, #tpu.memory_space<vmem>>, vector<8x256xf32>,
    return
  }
  func.func @transform_0(%arg0: i32) -> (i32, i32) {
    %c0_i32 = arith.constant 0 : i32
    %c0_i32_0 = arith.constant 0 : i32
    return %arg0, %c0_i32 : i32, i32
  }
  func.func @transform_1(%arg0: i32) -> (i32, i32) {
    %c0_i32 = arith.constant 0 : i32
    %c0_i32_0 = arith.constant 0 : i32
    return %arg0, %c0_i32 : i32, i32
  }
}

</mosaic_0001>

<bundles_post_ra>
// kernel: tpu_custom_call.1
= control target key start
LH: loop header
LB: loop body
LE: loop exit
PB: predicated region body
PF: predicated region fallthrough
CT: control target
= control target key end

     0   :  { %6 = vsyncpa [#allocation3], 0  ;;  %s144_s0 = inlined_call_operand.hbm [shape: f32[8,256], index: 0, kind: input, shape index: {}]   ;;  %s145_s1 = inlined_call_operand.hbm [shape: f32[8,256], index: 1, kind: output, shape index: {}]  }
   0x1   :  { %7 = vsyncpa [#allocation4], 0  ;;  %s108_s6 = smov [#allocation2]   ;;  %s60_s10 = scalar_lea.hbm %s144_s0, 256 }
   0x2   :  { %s14_s7 = sshll.u32 %s108_s6, 4  ;;  %p61_p0 = scmp.ne.s32.totalorder %s144_s0, %s60_s10  ;;  %s15_s7 = int_to_ptr.vmem [resolvable:$true] %s14_s7 }
   0x3   :  { %p64_p1 = scmp.lt.u32.totalorder %s60_s10, %s144_s0 }
   0x5   :  { %p66_p2 = pnand %p64_p1, %p61_p0 }
   0x7   :  { %69 = shalt.err (!%p66_p2)
}
   0x8   :  { %s70_s15 = scalar_lea.vmem %s15_s7, 256  ;;  %p75_p4 = scmp.lt.s32.totalorder %s15_s7, %s15_s7 }
   0x9   :  { %p71_p3 = scmp.ne.s32.totalorder %s15_s7, %s70_s15  ;;  %p76_p5 = scmp.lt.s32.totalorder %s70_s15, %s70_s15 }
   0xb   :  { %p77_p6 = por %p76_p5, %p75_p4 }
   0xd   :  { %p78_p7 = pnand %p77_p6, %p71_p3 }
   0xf   :  { %81 = shalt.err (!%p78_p7)
}
  0x10   :  { %17 = dma.hbm_to_vmem [thread:$0]  %s144_s0, 256, %s15_s7, [#allocation3]  }
  0x11   :  { %104 = dma.done.wait [#allocation3], 256  }
  0x12   :  { %105 = vsyncadd [#allocation3], 4294967040  ;;  %v21_v0 = vld [vmem:[#allocation2] sm:$0xff]  ;;  %v22_v1 = vld [vmem:[#allocation2 + $0x8] sm:$0xff]  ;;  %s109_s18 = smov [#allocation5]  }
  0x13   :  { %v23_v2 = vsub.f32 0.0, %v21_v0  ;;  %v24_v3 = vsub.f32 0.0, %v22_v1  ;;  %s41_s19 = sshll.u32 %s109_s18, 4  ;;  %s42_s19 = int_to_ptr.vmem [resolvable:$true] %s41_s19 }
  0x14   :  { %s82_s0 = scalar_lea.vmem %s42_s19, 256  ;;  %p87_p9 = scmp.lt.s32.totalorder %s42_s19, %s42_s19 }
  0x15   :  { %v25_v4 = vmul.f32 1.442695, %v23_v2  ;;  %v27_v5 = vmul.f32 1.442695, %v24_v3  ;;  %p83_p8 = scmp.ne.s32.totalorder %s42_s19, %s82_s0  ;;  %p88_p10 = scmp.lt.s32.totalorder %s82_s0, %s82_s0 }
  0x17   :  { %52 = vpow2.f32 %v25_v4  ;;  %p89_p11 = por %p88_p10, %p87_p9 }
  0x18   :  { %54 = vpow2.f32 %v27_v5 }
  0x19   :  { %p90_p12 = pnand %p89_p11, %p83_p8 }
  0x21   :  { %v53_v6 = vpop.eup %52 }
  0x22   :  { %v55_v7 = vpop.eup %54  ;;  %v29_v8 = vadd.f32 1.0, %v53_v6 }
  0x23   :  { %v30_v9 = vadd.f32 1.0, %v55_v7 }
  0x24   :  { %56 = vrcp.f32 %v29_v8 }
  0x25   :  { %58 = vrcp.f32 %v30_v9 }
  0x2e   :  { %v57_v10 = vpop.eup %56 }
  0x2f   :  { %v59_v11 = vpop.eup %58  ;;  %33 = vst [vmem:[#allocation5] sm:$0xff] %v57_v10 }
  0x30   :  { %34 = vst [vmem:[#allocation5 + $0x8] sm:$0xff] %v59_v11 }
  0x31   :  { %93 = shalt.err (!%p90_p12)
}
  0x32   :  { %s94_s22 = scalar_lea.hbm %s145_s1, 256 }
  0x33   :  { %p95_p13 = scmp.ne.s32.totalorder %s145_s1, %s94_s22  ;;  %p98_p0 = scmp.lt.u32.totalorder %s94_s22, %s145_s1 }
  0x35   :  { %p100_p1 = pnand %p98_p0, %p95_p13 }
  0x37   :  { %103 = shalt.err (!%p100_p1)
}
  0x38   :  { %44 = dma.vmem_to_hbm [thread:$0]  %s42_s19, 256, %s145_s1, [#allocation4]  }
  0x39   :  { %106 = dma.done.wait [#allocation4], 256  }
  0x3a   :  { %107 = vsyncadd [#allocation4], 4294967040 }
  0x3b   :  { %48 = vsyncpa [#allocation3], 1 }
  0x3c   :  { %49 = vsyncpa [#allocation4], 1 }

</bundles_post_ra>
